<compile_context>
chip_gen: v5e
topology: v5e:2x2
jax: 0.10.0
libtpu: 0.0.40
codegen_flags: <defaults>
</compile_context>

<pallas_src>
import jax
import jax.numpy as jnp
from jax import lax
from jax.experimental import pallas as pl
from jax.experimental.pallas import tpu as pltpu

_INV_SQRT2 = 0.7071067811865476
_MAX_TBR = 2048           # tile rows (each row = 128 lanes) -> 256K elems / step
_PALLAS_MIN_BATCH = 512   # below this, fused XLA wins (launch + transpose overhead)


def _model_kernel(w_ref, b_ref, x_ref, o_ref):
    # w_ref: SMEM (3,)  f32        Linear weight (flattened)
    # b_ref: SMEM (1,)  f32        bias with '+1' folded in: b' = bias + w0 + w1 + w2
    # x_ref: VMEM (3, TBR, 128) f32  feature-major, batch dense over (sublane, lane)
    # o_ref: VMEM (TBR, 128)    f32
    g0 = lax.erf(x_ref[0] * _INV_SQRT2)   # (TBR, 128) fully dense vregs
    g1 = lax.erf(x_ref[1] * _INV_SQRT2)
    g2 = lax.erf(x_ref[2] * _INV_SQRT2)
    # Linear(3 -> 1) as three scalar FMAs on the VPU (no MXU, no cross-lane reduce).
    o_ref[...] = (g0 * w_ref[0] + g1 * w_ref[1] + g2 * w_ref[2]
                  + b_ref[0]).astype(o_ref.dtype)


def _model_ref(x, weight, bias):
    """Pure-JAX reference (also the small-batch fast path)."""
    return (lax.erf(x * _INV_SQRT2) + 1.0) @ weight.T + bias


def model_forward(x, weight, bias, *, use_pallas=None):
    """x: (B, 3) f32, weight: (1, 3) f32, bias: (1,) f32 -> (B, 1) f32."""
    B, F = x.shape
    assert F == 3

    if use_pallas is None:
        use_pallas = B >= _PALLAS_MIN_BATCH
    if not use_pallas:
        return _model_ref(x, weight, bias)

    # --- tiling: batch rides (sublane, lane); tile rows are sublane-aligned ---
    n_rows = pl.cdiv(B, 128)                 # 128-lane rows of batch
    if n_rows <= 1:
        n_steps, tbr = 1, 1                  # block == full array -> legal layout
    else:
        n_steps = max(2, pl.cdiv(n_rows, _MAX_TBR))      # >=2 steps for v7x megacore
        tbr = pl.cdiv(pl.cdiv(n_rows, n_steps), 8) * 8   # multiple of 8 sublanes
    n_rows_pad = n_steps * tbr
    b_pad = n_rows_pad * 128

    # Single pad+transpose pass; the reshape is a free view of the (3, b_pad) result.
    x_pad = jnp.pad(x, ((0, b_pad - B), (0, 0))) if b_pad != B else x
    xt = x_pad.T.reshape(3, n_rows_pad, 128)

    # Fold the '+1' of (erf(.) + 1) into the bias: w.(g+1) + b == w.g + (b + sum(w)).
    w_flat = weight.reshape(-1).astype(jnp.float32)
    b_fold = (bias.reshape(-1).astype(jnp.float32) + jnp.sum(w_flat)).reshape(1)

    out = pl.pallas_call(
        _model_kernel,
        out_shape=jax.ShapeDtypeStruct((n_rows_pad, 128), x.dtype),
        grid_spec=pltpu.PrefetchScalarGridSpec(
            num_scalar_prefetch=0,
            grid=(n_steps,),
            in_specs=[
                pl.BlockSpec(memory_space=pltpu.MemorySpace.SMEM),   # weight (3,)
                pl.BlockSpec(memory_space=pltpu.MemorySpace.SMEM),   # folded bias (1,)
                pl.BlockSpec((3, tbr, 128), lambda i: (0, i, 0)),    # x (3, n_rows_pad, 128)
            ],
            out_specs=pl.BlockSpec((tbr, 128), lambda i: (i, 0)),
        ),
        compiler_params=pltpu.CompilerParams(
            dimension_semantics=("parallel",),
            vmem_limit_bytes=32 * 1024 * 1024,
        ),
    )(w_flat, b_fold, xt)

    # Padded tail rows hold garbage (w*erf(0)+b'); slice them off before reshaping.
    return out.reshape(-1)[:B].reshape(B, 1)


if __name__ == "__main__":
    key = jax.random.PRNGKey(0)
    k_x, k_w, k_b = jax.random.split(key, 3)

    # Small batched input consistent with the module (v1: (B, 3) like torch.randn(1, 3)).
    B = 256
    x = jax.random.normal(k_x, (B, 3), dtype=jnp.float32)

    # Deterministic Linear(3, 1) params (torch default init: U(-1/sqrt(3), 1/sqrt(3))).
    bound = 1.0 / jnp.sqrt(3.0)
    weight = jax.random.uniform(k_w, (1, 3), minval=-bound, maxval=bound, dtype=jnp.float32)
    bias = jax.random.uniform(k_b, (1,), minval=-bound, maxval=bound, dtype=jnp.float32)

    # Force the Pallas path so the kernel itself is exercised.
    out = model_forward(x, weight, bias, use_pallas=True)
    out = jax.block_until_ready(out)

    ref = _model_ref(x, weight, bias)
    assert out.shape == (B, 1)
    assert jnp.allclose(out, ref, atol=1e-5, rtol=1e-5)

    # Sanity-check the auto-dispatch (tiny-B -> fused XLA) path too.
    out_small = model_forward(x[:4], weight, bias)
    assert jnp.allclose(out_small, _model_ref(x[:4], weight, bias), atol=1e-5, rtol=1e-5)

    print("KERNEL_OK")
</pallas_src>

<mosaic_0001>
module attributes {stable_mosaic.version = 11 : i64} {
  func.func @_model_kernel(%arg0: i32, %arg1: memref<3xf32, #tpu.memory_space<smem>>, %arg2: memref<1xf32, #tpu.memory_space<smem>>, %arg3: memref<3x8x128xf32, #tpu.memory_space<vmem>>, %arg4: memref<8x128xf32, #tpu.memory_space<vmem>>) attributes {dimension_semantics = [#tpu.dimension_semantics<parallel>], iteration_bounds = array<i64: 2>, scalar_prefetch = 0 : i64, scratch_operands = 0 : i64, tpu.core_type = #tpu.core_type<tc>, window_params = [{transform_indices = @transform_0, window_bounds = array<i64: 3>}, {transform_indices = @transform_1, window_bounds = array<i64: 1>}, {transform_indices = @transform_2, window_bounds = array<i64: 3, 8, 128>}, {transform_indices = @transform_3, window_bounds = array<i64: 8, 128>}]} {
    %c0 = arith.constant 0 : index
    %c0_0 = arith.constant 0 : index
    %c0_1 = arith.constant 0 : index
    %0 = vector.load %arg3[%c0, %c0_0, %c0_1] : memref<3x8x128xf32, #tpu.memory_space<vmem>>, vector<1x8x128xf32>
    %1 = vector.shape_cast %0 : vector<1x8x128xf32> to vector<8x128xf32>
    %cst = arith.constant 0.707106769 : f32
    %2 = vector.broadcast %cst : f32 to vector<8x128xf32>
    %3 = arith.mulf %1, %2 : vector<8x128xf32>
    %4 = math.erf %3 : vector<8x128xf32>
    %c1 = arith.constant 1 : index
    %c0_2 = arith.constant 0 : index
    %c0_3 = arith.constant 0 : index
    %5 = vector.load %arg3[%c1, %c0_2, %c0_3] : memref<3x8x128xf32, #tpu.memory_space<vmem>>, vector<1x8x128xf32>
    %6 = vector.shape_cast %5 : vector<1x8x128xf32> to vector<8x128xf32>
    %cst_4 = arith.constant 0.707106769 : f32
    %7 = vector.broadcast %cst_4 : f32 to vector<8x128xf32>
    %8 = arith.mulf %6, %7 : vector<8x128xf32>
    %9 = math.erf %8 : vector<8x128xf32>
    %c2 = arith.constant 2 : index
    %c0_5 = arith.constant 0 : index
    %c0_6 = arith.constant 0 : index
    %10 = vector.load %arg3[%c2, %c0_5, %c0_6] : memref<3x8x128xf32, #tpu.memory_space<vmem>>, vector<1x8x128xf32>
    %11 = vector.shape_cast %10 : vector<1x8x128xf32> to vector<8x128xf32>
    %cst_7 = arith.constant 0.707106769 : f32
    %12 = vector.broadcast %cst_7 : f32 to vector<8x128xf32>
    %13 = arith.mulf %11, %12 : vector<8x128xf32>
    %14 = math.erf %13 : vector<8x128xf32>
    %c0_8 = arith.constant 0 : index
    %15 = memref.load %arg1[%c0_8] : memref<3xf32, #tpu.memory_space<smem>>
    %16 = vector.broadcast %15 : f32 to vector<8x128xf32>
    %17 = arith.mulf %4, %16 : vector<8x128xf32>
    %c1_9 = arith.constant 1 : index
    %18 = memref.load %arg1[%c1_9] : memref<3xf32, #tpu.memory_space<smem>>
    %19 = vector.broadcast %18 : f32 to vector<8x128xf32>
    %20 = arith.mulf %9, %19 : vector<8x128xf32>
    %21 = arith.addf %17, %20 : vector<8x128xf32>
    %c2_10 = arith.constant 2 : index
    %22 = memref.load %arg1[%c2_10] : memref<3xf32, #tpu.memory_space<smem>>
    %23 = vector.broadcast %22 : f32 to vector<8x128xf32>
    %24 = arith.mulf %14, %23 : vector<8x128xf32>
    %25 = arith.addf %21, %24 : vector<8x128xf32>
    %c0_11 = arith.constant 0 : index
    %26 = memref.load %arg2[%c0_11] : memref<1xf32, #tpu.memory_space<smem>>
    %27 = vector.broadcast %26 : f32 to vector<8x128xf32>
    %28 = arith.addf %25, %27 : vector<8x128xf32>
    %c0_12 = arith.constant 0 : index
    %c0_13 = arith.constant 0 : index
    %29 = vector.load %arg4[%c0_12, %c0_13] : memref<8x128xf32, #tpu.memory_space<vmem>>, vector<8x128xf32>
    tpu.vector_store %arg4[%c0_12, %c0_13], %28 {strides = array<i32>} : memref<8x128xf32, #tpu.memory_space<vmem>>, vector<8x128xf32>,
    return
  }
  func.func @transform_0(%arg0: i32) -> i32 {
    %c0_i32 = arith.constant 0 : i32
    %c0_i32_0 = arith.constant 0 : i32
    return %c0_i32 : i32
  }
  func.func @transform_1(%arg0: i32) -> i32 {
    %c0_i32 = arith.constant 0 : i32
    %c0_i32_0 = arith.constant 0 : i32
    return %c0_i32 : i32
  }
  func.func @transform_2(%arg0: i32) -> (i32, i32, i32) {
    %c0_i32 = arith.constant 0 : i32
    %c0_i32_0 = arith.constant 0 : i32
    %c0_i32_1 = arith.constant 0 : i32
    return %c0_i32, %arg0, %c0_i32_0 : i32, i32, i32
  }
  func.func @transform_3(%arg0: i32) -> (i32, i32) {
    %c0_i32 = arith.constant 0 : i32
    %c0_i32_0 = arith.constant 0 : i32
    return %arg0, %c0_i32 : i32, i32
  }
}

</mosaic_0001>

<bundles_post_ra>
// kernel: tpu_custom_call.1
= control target key start
LH: loop header
LB: loop body
LE: loop exit
PB: predicated region body
PF: predicated region fallthrough
CT: control target
= control target key end

     0   :  { %s860_s0 = inlined_call_operand.vmem [shape: f32[3], index: 0, kind: input, shape index: {}]   ;;  %s861_s1 = inlined_call_operand.<no memory space> [shape: f32[1], index: 1, kind: input, shape index: {}]   ;;  %s862_s2 = inlined_call_operand.hbm [shape: f32[3,16,128], index: 2, kind: input, shape index: {}]   ;;  %s863_s3 = inlined_call_operand.hbm [shape: f32[16,128], index: 3, kind: output, shape index: {}]  }
   0x1   :  { %8 = sst [smem:[#allocation2]] %s861_s1 }
   0x2   :  { %9 = vsyncpa [#allocation6], 0 }
   0x3   :  { %10 = vsyncpa [#allocation4], 0 }
   0x4   :  { %12 = vsyncpa [#allocation4 + $0x1], 0 }
   0x5   :  { %13 = vsyncpa [#allocation5], 0 }
   0x6   :  { %15 = vsyncpa [#allocation5 + $0x1], 0  ;;  %s677_s14 = smov 0   ;;  %s679_s15 = smov 0  }
   0x7   :  { %s681_s16 = smov 0   ;;  %s683_s17 = smov 0  }
   0x8 LB: > { %s698_s1 = sadd.s32 4294967295, %s648_s17   ;;  %s446_s18 = sadd.s32 4294967294, %s648_s17   ;;  %s648_s17 = sphi %s683_s17, %s878_s17   ;;  %s644_s16 = sphi %s681_s16, %s877_s16   ;;  %s640_s15 = sphi %s679_s15, %s876_s15   ;;  %s636_s14 = sphi %s677_s14, %s875_s14  }
   0x9   : > { %s702_s19 = sadd.s32 1, %s648_s17   ;;  %s70_s20 = sadd.s32 1, %s644_s16 }
   0xa   : > { %s67_s21 = ssub.s32 %s648_s17, %s702_s19  ;;  %p77_p0 = scmp.ne.s32.totalorder %s644_s16, %s640_s15 }
   0xb   : > { %p68_p1 = scmp.eq.s32.totalorder %s67_s21, 0  ;;  %p78_p2 = scmp.eq.s32.totalorder %s648_s17, 0 }
   0xc   : > { %p83_p3 = scmp.ne.s32.totalorder %s640_s15, %s636_s14  ;;  %p84_p4 = scmp.eq.s32.totalorder %s698_s1, 0 }
   0xd   : > { %s714_s22 = scalar_select %p68_p1, %s644_s16, %s70_s20  }
   0xe   : > { %p716_p5 = por %p78_p2, %p77_p0  ;;  %p722_p6 = por %p84_p4, %p83_p3 }
   0xf   : > { %p107_p7 = scmp.eq.s32.totalorder %s698_s1, 1  ;;  %p113_p8 = scmp.eq.s32.totalorder %s446_s18, 1 }
  0x10   : > { %p447_p9 = scmp.ge.s32.totalorder %s648_s17, 1  ;;  %p120_p10 = scmp.lt.s32.totalorder %s648_s17, 3 }
  0x11   : > { %p729_p11 = por %p107_p7, %p77_p0  ;;  %p733_p12 = por %p113_p8, %p83_p3 }
  0x12   : > { %p737_p13 = pnand %p447_p9, %p120_p10  ;;  %s132_s30 = sshll.u32 %s860_s0, 4  ;;  %s133_s30 = int_to_ptr.vmem [resolvable:$true] %s132_s30 }
  0x13   : > { %p488_p2 = scmp.lt.s32.totalorder %s648_s17, 2  ;;  %s146_s4 = sand.u32 1, %s644_s16  }
  0x14   : > { %p475_p1 = pneg %p737_p13  ;;  %s465_s6 = smul.u32 24, %s146_s4 }
  0x15   : > { %p753_p3 = pnand %p488_p2, %p716_p5  ;;  %s650_s7 = smov [#allocation3]  }
  0x16   : > { %p476_p7 = pnand %p475_p1, %p84_p4  ;;  %s450_s8 = sshll.u32 %s648_s17, 3 }
  0x17   : > { %s150_s9 = scalar_lea.vmem [#allocation7], %s465_s6  ;;  %s154_s13 = scalar_lea.hbm %s862_s2, %s450_s8 }
  0x18   : > { %478 = dma.vmem_to_smem (!%p476_p7), %s133_s30, 16, %s650_s7, [#allocation6]  }
  0x19   : > { %s157_s10 = sshll.u32 %s150_s9, 4  ;;  %s155_s18 = sshll.u32 %s154_s13, 4  ;;  %s158_s10 = int_to_ptr.vmem [resolvable:$true] %s157_s10  ;;  %s156_s18 = int_to_ptr.hbm [resolvable:$true] %s155_s18 }
  0x1a   : > { %s147_s20 = scalar_lea.sflag [#allocation4], %s146_s4  ;;  %s548_s21 = sshra.s32 %s156_s18, 4  ;;  %s549_s21 = int_to_ptr.hbm [resolvable:$true] %s548_s21 }
  0x1b   : > { %s550_s23 = scalar_lea.hbm %s549_s21, 24  ;;  %p552_p8 = pneg %p753_p3 }
  0x1c   : > { %p551_p5 = scmp.ne.s32.totalorder %s549_s21, %s550_s23  ;;  %s555_s30 = scalar_lea.hbm %s862_s2, 48 }
  0x1d   : > { %p556_p1 = scmp.lt.s32.totalorder %s549_s21, %s862_s2  ;;  %p557_p2 = scmp.lt.s32.totalorder %s555_s30, %s550_s23 }
  0x1e   : > { %p553_p9 = pnand %p552_p8, %p551_p5 }
  0x1f   : > { %p558_p7 = por %p557_p2, %p556_p1 }
  0x20   : > { %p554_p10 = pneg %p553_p9 }
  0x22   : > { %p559_p0 = pnand %p558_p7, %p554_p10 }
  0x24   : > { %562 = shalt.err (!%p559_p0)
}
  0x25   : > { %s651_s4 = smov 256   ;;  %s652_s8 = smov 128  }
  0x26   : > { %s653_s9 = smov 8   ;;  %169 = sbr.rel (%p737_p13) target bundleno = 111 (0x6f), region = 32 }
  0x27   : > { %482 = dma.hbm_to_vmem [thread:$0]  (!%p753_p3), %s156_s18, 384, %s158_s10, %s147_s20, %s651_s4, %s652_s8, %s653_s9  }
  0x2b   : > { %623 = dma.done.wait (%p84_p4), [#allocation6], 16  }
  0x2c   : > { %625 = vsyncadd (%p84_p4), [#allocation6], 4294967280  ;;  %s778_s11 = sand.u32 1, %s640_s15  }
  0x2d   : > { %s466_s12 = smul.u32 24, %s778_s11  ;;  %s177_s13 = scalar_lea.sflag [#allocation4], %s778_s11 }
  0x2f   : > { %s180_s21 = scalar_lea.vmem [#allocation7], %s466_s12 }
  0x30   : > { %627 = dma.done.wait (%p722_p6), %s177_s13, 384  }
  0x31   : > { %629 = vsyncadd (%p722_p6), %s177_s13, 4294966912 }
  0x32   : > { %186 = sfence }
  0x33   : > { %v205_v0 = vld [vmem:[%s180_s21] sm:$0xff]  ;;  %v455_v1 = vld [vmem:[%s180_s21 + $0x8] sm:$0xff]  ;;  %v457_v2 = vld [vmem:[%s180_s21 + $0x10] sm:$0xff]  ;;  %s798_s24 = sld [smem:[#allocation3]]  ;;  %s453_s18 = sshll.u32 %s778_s11, 3 }
  0x34   : > { %v786_v3 = vmul.f32 0.70710677, %v205_v0  ;;  %v788_v4 = vmul.f32 0.70710677, %v455_v1  ;;  %v790_v5 = vmul.f32 0.70710677, %v457_v2 }
  0x35   : > { %s800_s27 = sld [smem:[#allocation3 + $0x1]]  ;;  %s462_s20 = sshll.u32 %s698_s1, 3 }
  0x36   : > { %v207_v6 = vmul.f32 %v786_v3, %v786_v3  ;;  %v250_v7 = vmul.f32 %v788_v4, %v788_v4  ;;  %v293_v8 = vmul.f32 %v790_v5, %v790_v5  ;;  %s814_s5 = sld [smem:[#allocation3 + $0x2]]  ;;  %s359_s29 = scalar_lea.hbm %s863_s3, %s462_s20 }
  0x37   : > { %s344_s10 = sld [smem:[#allocation2]]  ;;  %s204_s30 = scalar_lea.vmem [#allocation8], %s453_s18 }
  0x38   : > { %v208_v9 = vmin.f32 %v207_v6, 16.0  ;;  %v251_v10 = vmin.f32 %v250_v7, 16.0  ;;  %v294_v11 = vmin.f32 %v293_v8, 16.0  ;;  %s361_s6 = sshll.u32 %s204_s30, 4  ;;  %s363_s7 = sshll.u32 %s359_s29, 4  ;;  %s362_s6 = int_to_ptr.vmem [resolvable:$true] %s361_s6  ;;  %s364_s7 = int_to_ptr.hbm [resolvable:$true] %s363_s7 }
  0x39   : > { %s349_s1 = scalar_lea.sflag [#allocation5], %s778_s11  ;;  %s592_s4 = sshra.s32 %s364_s7, 4  ;;  %s593_s4 = int_to_ptr.hbm [resolvable:$true] %s592_s4 }
  0x3a   : > { %v209_v12 = vmul.f32 2.1237322e-06, %v208_v9  ;;  %v220_v13 = vmul.f32 3.8918573e-05, %v208_v9  ;;  %v252_v14 = vmul.f32 2.1237322e-06, %v251_v10  ;;  %p599_p0 = scmp.lt.s32.totalorder %s593_s4, %s863_s3 }
  0x3b   : > { %v263_v15 = vmul.f32 3.8918573e-05, %v251_v10  ;;  %v295_v16 = vmul.f32 2.1237322e-06, %v294_v11  ;;  %v306_v17 = vmul.f32 3.8918573e-05, %v294_v11 }
  0x3c   : > { %v210_v18 = vadd.f32 0.00028619796, %v209_v12  ;;  %v221_v19 = vadd.f32 0.001143296, %v220_v13  ;;  %v253_v20 = vadd.f32 0.00028619796, %v252_v14 }
  0x3d   : > { %v264_v21 = vadd.f32 0.001143296, %v263_v15  ;;  %v296_v22 = vadd.f32 0.00028619796, %v295_v16  ;;  %v307_v23 = vadd.f32 0.001143296, %v306_v17 }
  0x3e   : > { %v211_v24 = vmul.f32 %v210_v18, %v208_v9  ;;  %v222_v25 = vmul.f32 %v221_v19, %v208_v9  ;;  %v254_v26 = vmul.f32 %v253_v20, %v251_v10  ;;  %s594_s8 = scalar_lea.hbm %s593_s4, 8  ;;  %s598_s13 = scalar_lea.hbm %s863_s3, 16 }
  0x3f   : > { %v265_v27 = vmul.f32 %v264_v21, %v251_v10  ;;  %v297_v28 = vmul.f32 %v296_v22, %v294_v11  ;;  %v308_v29 = vmul.f32 %v307_v23, %v294_v11  ;;  %p595_p4 = scmp.ne.s32.totalorder %s593_s4, %s594_s8  ;;  %p600_p3 = scmp.lt.s32.totalorder %s598_s13, %s594_s8 }
  0x40   : > { %v212_v30 = vadd.f32 0.0036580483, %v211_v24  ;;  %v223_v31 = vadd.f32 0.014752088, %v222_v25  ;;  %v255_v32 = vadd.f32 0.0036580483, %v254_v26 }
  0x41   : > { %v266_v33 = vadd.f32 0.014752088, %v265_v27  ;;  %v298_v34 = vadd.f32 0.0036580483, %v297_v28  ;;  %v309_v35 = vadd.f32 0.014752088, %v308_v29  ;;  %p596_p6 = pnand %p595_p4, %p729_p11  ;;  %p601_p5 = por %p600_p3, %p599_p0 }
  0x42   : > { %v213_v36 = vmul.f32 %v212_v30, %v208_v9  ;;  %v224_v37 = vmul.f32 %v223_v31, %v208_v9  ;;  %v256_v38 = vmul.f32 %v255_v32, %v251_v10 }
  0x43   : > { %v267_v39 = vmul.f32 %v266_v33, %v251_v10  ;;  %v299_v40 = vmul.f32 %v298_v34, %v294_v11  ;;  %v310_v41 = vmul.f32 %v309_v35, %v294_v11  ;;  %p597_p13 = pneg %p596_p6 }
  0x44   : > { %v214_v42 = vadd.f32 0.05243302, %v213_v36  ;;  %v225_v43 = vadd.f32 0.112945676, %v224_v37  ;;  %v257_v44 = vadd.f32 0.05243302, %v256_v38 }
  0x45   : > { %v268_v45 = vadd.f32 0.112945676, %v267_v39  ;;  %v311_v46 = vadd.f32 0.112945676, %v310_v41  ;;  %v300_v48 = vadd.f32 0.05243302, %v299_v40  ;;  %p602_p8 = pnand %p601_p5, %p597_p13 }
  0x46   : > { %v226_v47 = vmul.f32 %v225_v43, %v208_v9  ;;  %v215_v52 = vmul.f32 %v214_v42, %v208_v9  ;;  %v258_v53 = vmul.f32 %v257_v44, %v251_v10 }
  0x47   : > { %v269_v49 = vmul.f32 %v268_v45, %v251_v10  ;;  %v312_v50 = vmul.f32 %v311_v46, %v294_v11  ;;  %v301_v57 = vmul.f32 %v300_v48, %v294_v11  ;;  %v334_v45 = vstv %s798_s24 }
  0x48   : > { %v227_v51 = vadd.f32 0.4994258, %v226_v47  ;;  %v216_v61 = vadd.f32 0.18741608, %v215_v52  ;;  %v259_v62 = vadd.f32 0.18741608, %v258_v53  ;;  %v337_v47 = vstv %s800_s27 }
  0x49   : > { %v270_v54 = vadd.f32 0.4994258, %v269_v49  ;;  %v313_v55 = vadd.f32 0.4994258, %v312_v50  ;;  %v302_v1 = vadd.f32 0.18741608, %v301_v57 }
  0x4a   : > { %v228_v56 = vmul.f32 %v227_v51, %v208_v9  ;;  %v217_v2 = vmul.f32 %v216_v61, %v208_v9  ;;  %v260_v6 = vmul.f32 %v259_v62, %v251_v10  ;;  %v341_v51 = vstv %s814_s5 }
  0x4b   : > { %v271_v58 = vmul.f32 %v270_v54, %v251_v10  ;;  %v314_v59 = vmul.f32 %v313_v55, %v294_v11  ;;  %v303_v7 = vmul.f32 %v302_v1, %v294_v11 }
  0x4c   : > { %v229_v60 = vadd.f32 1.0, %v228_v56  ;;  %v218_v13 = vadd.f32 1.1283791, %v217_v2  ;;  %v261_v16 = vadd.f32 1.1283791, %v260_v6  ;;  %v345_v56 = vstv %s344_s10 }
  0x4d   : > { %v272_v63 = vadd.f32 1.0, %v271_v58  ;;  %v315_v0 = vadd.f32 1.0, %v314_v59  ;;  %v304_v19 = vadd.f32 1.1283791, %v303_v7 }
  0x4e   : > { %527 = vrcp.f32 %v229_v60  ;;  %v241_v15 = vand.u32 2147483648, %v229_v60  ;;  %vm235_vm0 = vweird.f32 %v229_v60  ;;  %v239_v17 = vand.u32 2147483647, %v229_v60 }
  0x4f   : > { %529 = vrcp.f32 %v272_v63  ;;  %vm278_vm2 = vweird.f32 %v272_v63  ;;  %v284_v22 = vand.u32 2147483648, %v272_v63  ;;  %v282_v9 = vand.u32 2147483647, %v272_v63 }
  0x50   : > { %531 = vrcp.f32 %v315_v0  ;;  %v242_v24 = vor.u32 1.1754944e-38, %v241_v15  ;;  %vm321_vm4 = vweird.f32 %v315_v0  ;;  %v327_v25 = vand.u32 2147483648, %v315_v0 }
  0x51   : > { %v325_v29 = vand.u32 2147483647, %v315_v0  ;;  %v219_v30 = vmul.f32 %v218_v13, %v786_v3  ;;  %vm240_vm7 = vcmp.eq.f32.partialorder %v239_v17, 8.507059e+37  ;;  %v285_v33 = vor.u32 1.1754944e-38, %v284_v22 }
  0x52   : > { %v262_v34 = vmul.f32 %v261_v16, %v788_v4  ;;  %vm283_vm9 = vcmp.eq.f32.partialorder %v282_v9, 8.507059e+37  ;;  %v305_v37 = vmul.f32 %v304_v19, %v790_v5  ;;  %v328_v38 = vor.u32 1.1754944e-38, %v327_v25 }
  0x53   : > { %vm326_vm11 = vcmp.eq.f32.partialorder %v325_v29, 8.507059e+37 }
  0x54   : > { %v528_v8 = vpop.eup %527 }
  0x55   : > { %v530_v12 = vpop.eup %529  ;;  %v231_v14 = vmul.f32 %v528_v8, %v229_v60  ;;  %vm236_vm1 = vweird.f32 %v528_v8 }
  0x56   : > { %v274_v18 = vmul.f32 %v530_v12, %v272_v63  ;;  %v532_v20 = vpop.eup %531  ;;  %vm279_vm3 = vweird.f32 %v530_v12  ;;  %vm803_vm5 = vmor %vm235_vm0, %vm236_vm1 }
  0x57   : > { %v232_v21 = vsub.f32 1.0, %v231_v14  ;;  %v317_v10 = vmul.f32 %v532_v20, %v315_v0  ;;  %vm322_vm6 = vweird.f32 %v532_v20  ;;  %vm810_vm8 = vmor %vm278_vm2, %vm279_vm3 }
  0x58   : > { %v275_v23 = vsub.f32 1.0, %v274_v18  ;;  %vm323_vm10 = vmor %vm321_vm4, %vm322_vm6 }
  0x59   : > { %v233_v11 = vmul.f32 %v528_v8, %v232_v21  ;;  %v318_v28 = vsub.f32 1.0, %v317_v10 }
  0x5a   : > { %v276_v27 = vmul.f32 %v530_v12, %v275_v23 }
  0x5b   : > { %v234_v31 = vadd.f32 %v528_v8, %v233_v11  ;;  %v319_v36 = vmul.f32 %v532_v20, %v318_v28 }
  0x5c   : > { %v277_v35 = vadd.f32 %v530_v12, %v276_v27 }
  0x5d   : > { %v238_v3 = vsel %vm803_vm5, %v528_v8, %v234_v31  ;;  %v320_v4 = vadd.f32 %v532_v20, %v319_v36 }
  0x5e   : > { %v243_v39 = vsel %vm240_vm7, %v242_v24, %v238_v3  ;;  %v281_v40 = vsel %vm810_vm8, %v530_v12, %v277_v35 }
  0x5f   : > { %v244_v41 = vmul.f32 %v243_v39, %v219_v30  ;;  %v286_v42 = vsel %vm283_vm9, %v285_v33, %v281_v40  ;;  %v324_v44 = vsel %vm323_vm10, %v532_v20, %v320_v4 }
  0x60   : > { %v287_v43 = vmul.f32 %v286_v42, %v262_v34  ;;  %v329_v46 = vsel %vm326_vm11, %v328_v38, %v324_v44 }
  0x61   : > { %v454_v5 = vclamps-f32 %v244_v41, 1.0  ;;  %v330_v49 = vmul.f32 %v329_v46, %v305_v37 }
  0x62   : > { %v456_v48 = vclamps-f32 %v287_v43, 1.0 }
  0x63   : > { %v335_v50 = vmul.f32 %v454_v5, %v334_v45  ;;  %v458_v52 = vclamps-f32 %v330_v49, 1.0 }
  0x64   : > { %v338_v53 = vmul.f32 %v456_v48, %v337_v47 }
  0x65   : > { %v342_v55 = vmul.f32 %v458_v52, %v341_v51 }
  0x66   : > { %v339_v54 = vadd.f32 %v338_v53, %v335_v50 }
  0x68   : > { %v343_v57 = vadd.f32 %v342_v55, %v339_v54 }
  0x6a   : > { %v346_v58 = vadd.f32 %v345_v56, %v343_v57 }
  0x6c   : > { %347 = vst [vmem:[%s204_s30] sm:$0xff] %v346_v58 }
  0x6d   : > { %605 = shalt.err (!%p602_p8)
}
  0x6e   : > { %473 = dma.vmem_to_hbm [thread:$0]  (%p729_p11), %s362_s6, 128, %s364_s7, %s349_s1  }
  0x6f PF: > { %s375_s11 = sand.u32 1, %s636_s14   ;;  %p874_p9 = scmp.ge.s32.totalorder %s648_s17, 2 }
  0x70   : > { %s376_s27 = scalar_lea.sflag [#allocation5], %s375_s11 }
  0x71   : > { %p484_p10 = pnand %p874_p9, %p733_p12 }
  0x73   : > { %p485_p1 = pneg %p484_p10 }
  0x75   : > { %631 = dma.done.wait (%p485_p1), %s376_s27, 128  }
  0x76   : > { %633 = vsyncadd (%p485_p1), %s376_s27, 4294967168  ;;  %p18_p2 = scmp.ge.s32.totalorder %s702_s19, 4   ;;  %s875_s14 = smov %s640_s15 }
  0x77   : > { %s876_s15 = smov %s644_s16  ;;  %s877_s16 = smov %s714_s22 }
  0x78   : > { %s878_s17 = smov %s702_s19  ;;  %20 = sbr.rel (!%p18_p2) target bundleno = 8 (0x8), region = 84 }
  0x7d   :  { %382 = vsyncpa [#allocation4], 1 }
  0x7e   :  { %384 = vsyncpa [#allocation4 + $0x1], 1 }
  0x7f   :  { %385 = vsyncpa [#allocation5], 1 }
  0x80   :  { %387 = vsyncpa [#allocation5 + $0x1], 1 }
  0x81   :  { %388 = vsyncpa [#allocation6], 1 }
  0x82   :  { %390 = vsyncpa [#allocation6 + $0x1], 1 }

</bundles_post_ra>
